<compile_context>
chip_gen: v5e
topology: v5e:2x2
jax: 0.10.0
libtpu: 0.0.40
codegen_flags: <defaults>
</compile_context>

<pallas_src>
import math
import functools

import jax
import jax.numpy as jnp
from jax.experimental import pallas as pl
from jax.experimental.pallas import tpu as pltpu


def _round_up(x, m):
    return ((x + m - 1) // m) * m


def _tile_padded_bytes(shape, itemsize=4, sublane=8, lane=128):
    """Bytes a VMEM block really occupies once the last two dims are tile-padded (f32: (8,128))."""
    s = list(shape)
    if len(s) >= 1:
        s[-1] = _round_up(s[-1], lane)
    if len(s) >= 2:
        s[-2] = _round_up(s[-2], sublane)
    n = 1
    for d in s:
        n *= d
    return n * itemsize


def _downsample_matmul_kernel(x_ref, w_ref, o_ref):
    """One M-tile per grid step.

    x_ref: (TILE_M, K_pad)   tap-unrolled rows (9*C channels + ones bias column, zero padded)
    w_ref: (K_pad, C_pad)    (tap, C_in)-major weight rows (+ bias row), zero padded
    o_ref: (TILE_M, C_pad)   lane-dense output tile
    """
    o_ref[...] = jnp.dot(
        x_ref[...], w_ref[...], preferred_element_type=jnp.float32
    ).astype(o_ref.dtype)


def downsample_pallas(x_nchw, weight, bias, temb=None):
    """x_nchw: (B, C, H, W) f32; weight: (C, C, 3, 3) OIHW; bias: (C,). temb is unused (as in PyTorch)."""
    del temb  # DownSample.forward ignores temb
    B, C, H, W = x_nchw.shape
    H_out = (H + 1) // 2
    W_out = (W + 1) // 2
    HW_out = H_out * W_out

    # ---- host-side layout (pure plumbing): pad, extract the 9 strided taps, build lane-dense LHS ----
    # Conv padding=1 on top/left; bottom/right padded just enough for every tap slice.
    pad_bottom = (2 * H_out + 1) - (H + 1)
    pad_right = (2 * W_out + 1) - (W + 1)
    xp = jnp.pad(x_nchw, ((0, 0), (0, 0), (1, pad_bottom), (1, pad_right)))

    taps = []
    for dy in range(3):
        for dx in range(3):
            taps.append(xp[:, :, dy:dy + 2 * H_out:2, dx:dx + 2 * W_out:2])  # (B, C, H_out, W_out)
    x_taps = jnp.stack(taps, axis=-1)                       # (B, C, H_out, W_out, 9)
    x_taps = jnp.transpose(x_taps, (0, 2, 3, 4, 1))         # (B, H_out, W_out, 9, C)
    x_cols = x_taps.reshape(B * HW_out, 9 * C)              # rows: (b, y, x), cols: (tap, c_in)

    # Fold the bias in as one extra K row against a ones column (free on the MXU).
    K_used = 9 * C + 1
    K_pad = _round_up(K_used, 128)
    C_pad = _round_up(C, 128)

    total_M = B * HW_out
    TILE_M = min(256, _round_up(total_M, 8))                # whole batch in one step at demo size
    total_M_pad = _round_up(total_M, TILE_M)

    lhs = jnp.concatenate([x_cols, jnp.ones((total_M, 1), x_nchw.dtype)], axis=1)
    lhs = jnp.pad(lhs, ((0, total_M_pad - total_M), (0, K_pad - K_used)))

    w_rows = jnp.transpose(weight, (2, 3, 1, 0)).reshape(9 * C, C)   # (tap, C_in)-major -> (9C, C_out)
    w_full = jnp.concatenate([w_rows, bias.reshape(1, C)], axis=0)   # bias row at K index 9C
    w_full = jnp.pad(w_full, ((0, K_pad - K_used), (0, C_pad - C)))  # (K_pad, C_pad)

    num_m_tiles = total_M_pad // TILE_M

    # ---- VMEM budget with tile-padded blocks + generation-aware cap ----
    x_blk = _tile_padded_bytes((TILE_M, K_pad))
    w_blk = _tile_padded_bytes((K_pad, C_pad))
    o_blk = _tile_padded_bytes((TILE_M, C_pad))
    vmem_est = 2 * x_blk + 1 * w_blk + 2 * o_blk + o_blk    # dbl-buf in/out, single-buf weight, scratch
    try:
        vmem_cap = int(pltpu.get_tpu_info().vmem_capacity_bytes)
    except Exception:
        vmem_cap = 64 << 20                                 # conservative (v7x per-core VMEM)
    vmem_limit = max(4 << 20, min(int(vmem_est * 2) + (2 << 20), int(vmem_cap * 0.9)))

    cost = pl.CostEstimate(
        flops=2 * B * HW_out * 9 * C * C,                   # real C, not padded
        transcendentals=0,
        bytes_accessed=(lhs.size + w_full.size + total_M_pad * C_pad) * 4,
    )

    out = pl.pallas_call(
        _downsample_matmul_kernel,
        out_shape=jax.ShapeDtypeStruct((total_M_pad, C_pad), x_nchw.dtype),
        grid_spec=pltpu.PrefetchScalarGridSpec(
            num_scalar_prefetch=0,
            grid=(num_m_tiles,),
            in_specs=[
                pl.BlockSpec((TILE_M, K_pad), lambda m: (m, 0)),
                # Constant across the grid -> single-buffer to halve its VMEM footprint.
                pl.BlockSpec((K_pad, C_pad), lambda m: (0, 0),
                             pipeline_mode=pl.Buffered(1)),
            ],
            out_specs=pl.BlockSpec((TILE_M, C_pad), lambda m: (m, 0)),
        ),
        compiler_params=pltpu.CompilerParams(
            dimension_semantics=("parallel",),
            vmem_limit_bytes=vmem_limit,
        ),
        cost_estimate=cost,
    )(lhs, w_full)

    # (total_M_pad, C_pad) -> NCHW; row/channel-pad slicing fuses into the final transpose.
    out = out[:total_M, :C].reshape(B, H_out, W_out, C)
    return jnp.transpose(out, (0, 3, 1, 2))


# --------------------------- init + pure-JAX reference ---------------------------

def make_params(key, C):
    # Conv2d(C, C, 3): xavier_uniform_ -> fan_in = fan_out = C * 9
    fan = C * 9
    bound = math.sqrt(6.0 / (fan + fan))
    weight = jax.random.uniform(key, (C, C, 3, 3), jnp.float32,
                                minval=-bound, maxval=bound)
    bias = jnp.zeros((C,), jnp.float32)
    return {"weight": weight, "bias": bias}


def downsample_reference(x_nchw, weight, bias):
    out = jax.lax.conv_general_dilated(
        x_nchw, weight,
        window_strides=(2, 2),
        padding=((1, 1), (1, 1)),
        dimension_numbers=("NCHW", "OIHW", "NCHW"),
    )
    return out + bias[None, :, None, None]


if __name__ == "__main__":
    B, C, H, W = 2, 64, 16, 16
    key = jax.random.PRNGKey(0)
    kx, kw = jax.random.split(key)
    x = jax.random.normal(kx, (B, C, H, W), jnp.float32)
    params = make_params(kw, C)

    out = downsample_pallas(x, params["weight"], params["bias"], temb=None)
    out = jax.block_until_ready(out)

    ref = downsample_reference(x, params["weight"], params["bias"])
    assert out.shape == (B, C, H // 2, W // 2), out.shape
    assert jnp.allclose(out, ref, atol=1e-3, rtol=1e-3), float(jnp.max(jnp.abs(out - ref)))
    print("KERNEL_OK")
</pallas_src>

<mosaic_0001>
module attributes {stable_mosaic.version = 11 : i64} {
  func.func @_downsample_matmul_kernel(%arg0: i32, %arg1: memref<128x640xf32, #tpu.memory_space<vmem>>, %arg2: memref<640x128xf32, #tpu.memory_space<vmem>>, %arg3: memref<128x128xf32, #tpu.memory_space<vmem>>) attributes {dimension_semantics = [#tpu.dimension_semantics<parallel>], iteration_bounds = array<i64: 1>, scalar_prefetch = 0 : i64, scratch_operands = 0 : i64, tpu.core_type = #tpu.core_type<tc>, window_params = [{transform_indices = @transform_0, window_bounds = array<i64: 128, 640>}, {pipeline_mode = #tpu.pipeline_mode<synchronous>, transform_indices = @transform_1, window_bounds = array<i64: 640, 128>}, {transform_indices = @transform_2, window_bounds = array<i64: 128, 128>}]} {
    %c0 = arith.constant 0 : index
    %c0_0 = arith.constant 0 : index
    %0 = vector.load %arg1[%c0, %c0_0] : memref<128x640xf32, #tpu.memory_space<vmem>>, vector<128x640xf32>
    %c0_1 = arith.constant 0 : index
    %c0_2 = arith.constant 0 : index
    %1 = vector.load %arg2[%c0_1, %c0_2] : memref<640x128xf32, #tpu.memory_space<vmem>>, vector<640x128xf32>
    %cst = arith.constant dense<0.000000e+00> : vector<128x128xf32>
    %2 = tpu.matmul %0, %1, %cst {dimension_numbers = #tpu.dot_dimension_numbers<[1], [0], [0], [1], [0, 0, 1, 1], [], []>} : vector<128x640xf32>, vector<640x128xf32>, vector<128x128xf32> -> vector<128x128xf32>
    %c0_3 = arith.constant 0 : index
    %c0_4 = arith.constant 0 : index
    %3 = vector.load %arg3[%c0_3, %c0_4] : memref<128x128xf32, #tpu.memory_space<vmem>>, vector<128x128xf32>
    tpu.vector_store %arg3[%c0_3, %c0_4], %2 {strides = array<i32>} : memref<128x128xf32, #tpu.memory_space<vmem>>, vector<128x128xf32>,
    return
  }
  func.func @transform_0(%arg0: i32) -> (i32, i32) {
    %c0_i32 = arith.constant 0 : i32
    %c0_i32_0 = arith.constant 0 : i32
    return %arg0, %c0_i32 : i32, i32
  }
  func.func @transform_1(%arg0: i32) -> (i32, i32) {
    %c0_i32 = arith.constant 0 : i32
    %c0_i32_0 = arith.constant 0 : i32
    %c0_i32_1 = arith.constant 0 : i32
    return %c0_i32, %c0_i32_0 : i32, i32
  }
  func.func @transform_2(%arg0: i32) -> (i32, i32) {
    %c0_i32 = arith.constant 0 : i32
    %c0_i32_0 = arith.constant 0 : i32
    return %arg0, %c0_i32 : i32, i32
  }
}

</mosaic_0001>

<bundles_post_ra>
// kernel: tpu_custom_call.1
= control target key start
LH: loop header
LB: loop body
LE: loop exit
PB: predicated region body
PF: predicated region fallthrough
CT: control target
= control target key end

     0   :  { %7 = vsyncpa [#allocation3], 0  ;;  %s771_s0 = inlined_call_operand.hbm [shape: f32[128,640], index: 0, kind: input, shape index: {}]   ;;  %s772_s1 = inlined_call_operand.hbm [shape: f32[640,128], index: 1, kind: input, shape index: {}]   ;;  %s773_s2 = inlined_call_operand.hbm [shape: f32[128,128], index: 2, kind: output, shape index: {}]  }
   0x1   :  { %8 = vsyncpa [#allocation6], 0 }
   0x2   :  { %9 = vsyncpa [#allocation4], 0  ;;  %s14_s11 = sshll.u32 %s771_s0, 4  ;;  %s698_s12 = smov [#allocation2]   ;;  %s15_s11 = int_to_ptr.hbm [resolvable:$true] %s14_s11 }
   0x3   :  { %s16_s13 = sshll.u32 %s698_s12, 4  ;;  %s27_s16 = sshll.u32 %s772_s1, 4  ;;  %s17_s13 = int_to_ptr.vmem [resolvable:$true] %s16_s13  ;;  %s28_s16 = int_to_ptr.hbm [resolvable:$true] %s27_s16 }
   0x4   :  { %s699_s17 = smov 640   ;;  %s700_s18 = smov 40  }
   0x5   :  { %22 = dma.hbm_to_vmem [thread:$0]  %s15_s11, 10240, %s17_s13, [#allocation3], %s699_s17, %s699_s17, %s700_s18  }
   0x6   :  { %s701_s19 = smov [#allocation5]   ;;  %s702_s21 = smov 128  }
   0x7   :  { %s29_s20 = sshll.u32 %s701_s19, 4  ;;  %s703_s22 = smov 8   ;;  %s30_s20 = int_to_ptr.vmem [resolvable:$true] %s29_s20 }
   0x8   :  { %35 = dma.hbm_to_vmem [thread:$0]  %s28_s16, 10240, %s30_s20, [#allocation6], %s702_s21, %s702_s21, %s703_s22  }
   0x9   :  { %692 = dma.done.wait [#allocation3], 10240  }
   0xa   :  { %693 = vsyncadd [#allocation3], 4294957056 }
   0xb   :  { %694 = dma.done.wait [#allocation6], 10240  }
   0xc   :  { %695 = vsyncadd [#allocation6], 4294957056  ;;  %v139_v0 = vld [vmem:[#allocation5 + $0x78] sm:$0xff]  ;;  %v138_v1 = vld [vmem:[#allocation5 + $0x70] sm:$0xff]  ;;  %s704_s0 = smov [#allocation7]   ;;  %s551_s25 = sshll.u32 %s773_s2, 4  ;;  %s552_s25 = int_to_ptr.hbm [resolvable:$true] %s551_s25 }
   0xd   :  { %565 = vmatpush.msra.mxu1 %v139_v0  ;;  %566 = vmatpush.msra.mxu2 %v139_v0  ;;  %v137_v2 = vld [vmem:[#allocation5 + $0x68] sm:$0xff]  ;;  %v136_v3 = vld [vmem:[#allocation5 + $0x60] sm:$0xff]  ;;  %v135_v4 = vld [vmem:[#allocation5 + $0x58] sm:$0xff]  ;;  %s549_s1 = sshll.u32 %s704_s0, 4  ;;  %s550_s1 = int_to_ptr.vmem [resolvable:$true] %s549_s1 }
   0xe   :  { %567 = vmatpush.msra.mxu3 %v139_v0  ;;  %204 = vmatpush.msra.mxu0 %v139_v0  ;;  %v134_v5 = vld [vmem:[#allocation5 + $0x50] sm:$0xff]  ;;  %v133_v6 = vld [vmem:[#allocation5 + $0x48] sm:$0xff]  ;;  %v132_v7 = vld [vmem:[#allocation5 + $0x40] sm:$0xff] }
   0xf   :  { %568 = vmatpush.msra.mxu1 %v138_v1  ;;  %569 = vmatpush.msra.mxu2 %v138_v1  ;;  %v131_v8 = vld [vmem:[#allocation5 + $0x38] sm:$0xff]  ;;  %v130_v9 = vld [vmem:[#allocation5 + $0x30] sm:$0xff]  ;;  %v129_v10 = vld [vmem:[#allocation5 + $0x28] sm:$0xff] }
  0x10   :  { %570 = vmatpush.msra.mxu3 %v138_v1  ;;  %205 = vmatpush.msra.mxu0 %v138_v1  ;;  %v128_v11 = vld [vmem:[#allocation5 + $0x20] sm:$0xff]  ;;  %v127_v12 = vld [vmem:[#allocation5 + $0x18] sm:$0xff]  ;;  %v126_v13 = vld [vmem:[#allocation5 + $0x10] sm:$0xff] }
  0x11   :  { %571 = vmatpush.msra.mxu1 %v137_v2  ;;  %572 = vmatpush.msra.mxu2 %v137_v2  ;;  %v125_v14 = vld [vmem:[#allocation5 + $0x8] sm:$0xff]  ;;  %v124_v15 = vld [vmem:[#allocation5] sm:$0xff]  ;;  %v171_v18 = vld [vmem:[#allocation5 + $0x178] sm:$0xff] }
  0x12   :  { %573 = vmatpush.msra.mxu3 %v137_v2  ;;  %206 = vmatpush.msra.mxu0 %v137_v2  ;;  %v64_v16 = vld [vmem:[#allocation2 + $0xa0] sm:$0xff]  ;;  %v155_v19 = vld [vmem:[#allocation5 + $0xf8] sm:$0xff]  ;;  %v170_v21 = vld [vmem:[#allocation5 + $0x170] sm:$0xff] }
  0x13   :  { %574 = vmatpush.msra.mxu1 %v136_v3  ;;  %575 = vmatpush.msra.mxu2 %v136_v3  ;;  %v84_v17 = vld [vmem:[#allocation2 + $0x140] sm:$0xff]  ;;  %v187_v22 = vld [vmem:[#allocation5 + $0x1f8] sm:$0xff]  ;;  %v154_v23 = vld [vmem:[#allocation5 + $0xf0] sm:$0xff] }
  0x14   :  { %576 = vmatpush.msra.mxu3 %v136_v3  ;;  %207 = vmatpush.msra.mxu0 %v136_v3  ;;  %v104_v20 = vld [vmem:[#allocation2 + $0x1e0] sm:$0xff]  ;;  %v169_v24 = vld [vmem:[#allocation5 + $0x168] sm:$0xff]  ;;  %v186_v25 = vld [vmem:[#allocation5 + $0x1f0] sm:$0xff] }
  0x15   :  { %577 = vmatpush.msra.mxu1 %v135_v4  ;;  %578 = vmatpush.msra.mxu2 %v135_v4  ;;  %v153_v26 = vld [vmem:[#allocation5 + $0xe8] sm:$0xff]  ;;  %v44_v27 = vld [vmem:[#allocation2] sm:$0xff]  ;;  %v167_v33 = vld [vmem:[#allocation5 + $0x158] sm:$0xff] }
  0x16   :  { %579 = vmatpush.msra.mxu3 %v135_v4  ;;  %208 = vmatpush.msra.mxu0 %v135_v4  ;;  %v168_v28 = vld [vmem:[#allocation5 + $0x160] sm:$0xff]  ;;  %v185_v29 = vld [vmem:[#allocation5 + $0x1e8] sm:$0xff]  ;;  %v151_v35 = vld [vmem:[#allocation5 + $0xd8] sm:$0xff] }
  0x17   :  { %580 = vmatpush.msra.mxu1 %v134_v5  ;;  %581 = vmatpush.msra.mxu2 %v134_v5  ;;  %v152_v30 = vld [vmem:[#allocation5 + $0xe0] sm:$0xff]  ;;  %v89_v31 = vld [vmem:[#allocation2 + $0x168] sm:$0xff]  ;;  %v166_v37 = vld [vmem:[#allocation5 + $0x150] sm:$0xff] }
  0x18   :  { %582 = vmatpush.msra.mxu3 %v134_v5  ;;  %209 = vmatpush.msra.mxu0 %v134_v5  ;;  %v69_v32 = vld [vmem:[#allocation2 + $0xc8] sm:$0xff]  ;;  %v184_v34 = vld [vmem:[#allocation5 + $0x1e0] sm:$0xff]  ;;  %v183_v38 = vld [vmem:[#allocation5 + $0x1d8] sm:$0xff] }
  0x19   :  { %583 = vmatpush.msra.mxu1 %v133_v6  ;;  %584 = vmatpush.msra.mxu2 %v133_v6  ;;  %v109_v36 = vld [vmem:[#allocation2 + $0x208] sm:$0xff]  ;;  %v203_v39 = vld [vmem:[#allocation5 + $0x278] sm:$0xff]  ;;  %v150_v40 = vld [vmem:[#allocation5 + $0xd0] sm:$0xff] }
  0x1a   :  { %585 = vmatpush.msra.mxu3 %v133_v6  ;;  %210 = vmatpush.msra.mxu0 %v133_v6  ;;  %v165_v41 = vld [vmem:[#allocation5 + $0x148] sm:$0xff]  ;;  %v182_v42 = vld [vmem:[#allocation5 + $0x1d0] sm:$0xff]  ;;  %v164_v45 = vld [vmem:[#allocation5 + $0x140] sm:$0xff] }
  0x1b   :  { %586 = vmatpush.msra.mxu1 %v132_v7  ;;  %587 = vmatpush.msra.mxu2 %v132_v7  ;;  %v202_v43 = vld [vmem:[#allocation5 + $0x270] sm:$0xff]  ;;  %v149_v44 = vld [vmem:[#allocation5 + $0xc8] sm:$0xff]  ;;  %v148_v48 = vld [vmem:[#allocation5 + $0xc0] sm:$0xff] }
  0x1c   :  { %588 = vmatpush.msra.mxu3 %v132_v7  ;;  %211 = vmatpush.msra.mxu0 %v132_v7  ;;  %v181_v46 = vld [vmem:[#allocation5 + $0x1c8] sm:$0xff]  ;;  %v94_v49 = vld [vmem:[#allocation2 + $0x190] sm:$0xff]  ;;  %v163_v51 = vld [vmem:[#allocation5 + $0x138] sm:$0xff] }
  0x1d   :  { %589 = vmatpush.msra.mxu1 %v131_v8  ;;  %590 = vmatpush.msra.mxu2 %v131_v8  ;;  %v201_v47 = vld [vmem:[#allocation5 + $0x268] sm:$0xff]  ;;  %v74_v50 = vld [vmem:[#allocation2 + $0xf0] sm:$0xff]  ;;  %v180_v52 = vld [vmem:[#allocation5 + $0x1c0] sm:$0xff] }
  0x1e   :  { %591 = vmatpush.msra.mxu3 %v131_v8  ;;  %212 = vmatpush.msra.mxu0 %v131_v8  ;;  %v200_v53 = vld [vmem:[#allocation5 + $0x260] sm:$0xff]  ;;  %v147_v54 = vld [vmem:[#allocation5 + $0xb8] sm:$0xff]  ;;  %v49_v55 = vld [vmem:[#allocation2 + $0x28] sm:$0xff] }
  0x1f   :  { %592 = vmatpush.msra.mxu1 %v130_v9  ;;  %593 = vmatpush.msra.mxu2 %v130_v9  ;;  %v114_v56 = vld [vmem:[#allocation2 + $0x230] sm:$0xff]  ;;  %v179_v58 = vld [vmem:[#allocation5 + $0x1b8] sm:$0xff]  ;;  %v161_v61 = vld [vmem:[#allocation5 + $0x128] sm:$0xff] }
  0x20   :  { %594 = vmatpush.msra.mxu3 %v130_v9  ;;  %213 = vmatpush.msra.mxu0 %v130_v9  ;;  %v162_v57 = vld [vmem:[#allocation5 + $0x130] sm:$0xff]  ;;  %v199_v59 = vld [vmem:[#allocation5 + $0x258] sm:$0xff]  ;;  %v145_v0 = vld [vmem:[#allocation5 + $0xa8] sm:$0xff] }
  0x21   :  { %595 = vmatpush.msra.mxu1 %v129_v10  ;;  %596 = vmatpush.msra.mxu2 %v129_v10  ;;  %v146_v60 = vld [vmem:[#allocation5 + $0xb0] sm:$0xff]  ;;  %v160_v1 = vld [vmem:[#allocation5 + $0x120] sm:$0xff]  ;;  %v177_v2 = vld [vmem:[#allocation5 + $0x1a8] sm:$0xff] }
  0x22   :  { %597 = vmatpush.msra.mxu3 %v129_v10  ;;  %214 = vmatpush.msra.mxu0 %v129_v10  ;;  %v178_v62 = vld [vmem:[#allocation5 + $0x1b0] sm:$0xff]  ;;  %v197_v3 = vld [vmem:[#allocation5 + $0x248] sm:$0xff]  ;;  %v144_v4 = vld [vmem:[#allocation5 + $0xa0] sm:$0xff] }
  0x23   :  { %598 = vmatpush.msra.mxu1 %v128_v11  ;;  %599 = vmatpush.msra.mxu2 %v128_v11  ;;  %v198_v63 = vld [vmem:[#allocation5 + $0x250] sm:$0xff]  ;;  %v99_v5 = vld [vmem:[#allocation2 + $0x1b8] sm:$0xff]  ;;  %v176_v8 = vld [vmem:[#allocation5 + $0x1a0] sm:$0xff] }
  0x24   :  { %600 = vmatpush.msra.mxu3 %v128_v11  ;;  %215 = vmatpush.msra.mxu0 %v128_v11  ;;  %v79_v6 = vld [vmem:[#allocation2 + $0x118] sm:$0xff]  ;;  %v196_v9 = vld [vmem:[#allocation5 + $0x240] sm:$0xff]  ;;  %v54_v11 = vld [vmem:[#allocation2 + $0x50] sm:$0xff] }
  0x25   :  { %601 = vmatpush.msra.mxu1 %v127_v12  ;;  %602 = vmatpush.msra.mxu2 %v127_v12  ;;  %v159_v7 = vld [vmem:[#allocation5 + $0x118] sm:$0xff] }
  0x26   :  { %603 = vmatpush.msra.mxu3 %v127_v12  ;;  %216 = vmatpush.msra.mxu0 %v127_v12  ;;  %v143_v10 = vld [vmem:[#allocation5 + $0x98] sm:$0xff] }
  0x27   :  { %604 = vmatpush.msra.mxu1 %v126_v13  ;;  %605 = vmatpush.msra.mxu2 %v126_v13  ;;  %v119_v12 = vld [vmem:[#allocation2 + $0x258] sm:$0xff] }
  0x28   :  { %606 = vmatpush.msra.mxu3 %v126_v13  ;;  %217 = vmatpush.msra.mxu0 %v126_v13  ;;  %v158_v13 = vld [vmem:[#allocation5 + $0x110] sm:$0xff] }
  0x29   :  { %607 = vmatpush.msra.mxu1 %v125_v14  ;;  %608 = vmatpush.msra.mxu2 %v125_v14 }
  0x2a   :  { %609 = vmatpush.msra.mxu3 %v125_v14  ;;  %218 = vmatpush.msra.mxu0 %v125_v14  ;;  %v175_v14 = vld [vmem:[#allocation5 + $0x198] sm:$0xff] }
  0x2b   :  { %610 = vmatpush.msra.mxu1 %v124_v15  ;;  %611 = vmatpush.msra.mxu2 %v124_v15 }
  0x2c   :  { %232 = vmatmul.f32.vlgmr.msra.gmra.mxu1 %v64_v16  ;;  %244 = vmatmul.f32.vlgmr.msra.gmra.mxu2 %v84_v17  ;;  %v142_v16 = vld [vmem:[#allocation5 + $0x90] sm:$0xff]  ;;  %v157_v17 = vld [vmem:[#allocation5 + $0x108] sm:$0xff] }
  0x2d   :  { %334 = vmatpush.msrb.mxu2 %v171_v18  ;;  %612 = vmatpush.msra.mxu3 %v124_v15  ;;  %v174_v18 = vld [vmem:[#allocation5 + $0x190] sm:$0xff] }
  0x2e   :  { %269 = vmatpush.msrb.mxu1 %v155_v19  ;;  %256 = vmatmul.f32.vlgmr.msra.gmra.mxu3 %v104_v20  ;;  %v194_v19 = vld [vmem:[#allocation5 + $0x230] sm:$0xff]  ;;  %v141_v20 = vld [vmem:[#allocation5 + $0x88] sm:$0xff] }
  0x2f   :  { %335 = vmatpush.msrb.mxu2 %v170_v21  ;;  %399 = vmatpush.msrb.mxu3 %v187_v22  ;;  %v156_v21 = vld [vmem:[#allocation5 + $0x100] sm:$0xff]  ;;  %v173_v22 = vld [vmem:[#allocation5 + $0x188] sm:$0xff] }
  0x30   :  { %270 = vmatpush.msrb.mxu1 %v154_v23  ;;  %219 = vmatpush.msra.mxu0 %v124_v15  ;;  %v195_v15 = vld [vmem:[#allocation5 + $0x238] sm:$0xff]  ;;  %v193_v23 = vld [vmem:[#allocation5 + $0x228] sm:$0xff] }
  0x31   :  { %336 = vmatpush.msrb.mxu2 %v169_v24  ;;  %400 = vmatpush.msrb.mxu3 %v186_v25  ;;  %v140_v24 = vld [vmem:[#allocation5 + $0x80] sm:$0xff]  ;;  %v46_v25 = vld [vmem:[#allocation2 + $0x10] sm:$0xff] }
  0x32   :  { %271 = vmatpush.msrb.mxu1 %v153_v26  ;;  %220 = vmatmul.f32.vlgmr.msra.gmra.mxu0 %v44_v27  ;;  %v45_v26 = vld [vmem:[#allocation2 + $0x8] sm:$0xff]  ;;  %v172_v27 = vld [vmem:[#allocation5 + $0x180] sm:$0xff] }
  0x33   :  { %337 = vmatpush.msrb.mxu2 %v168_v28  ;;  %401 = vmatpush.msrb.mxu3 %v185_v29  ;;  %v192_v28 = vld [vmem:[#allocation5 + $0x220] sm:$0xff]  ;;  %v47_v29 = vld [vmem:[#allocation2 + $0x18] sm:$0xff] }
  0x34   :  { %272 = vmatpush.msrb.mxu1 %v152_v30  ;;  %247 = vmatmul.f32.gmra.mxu2 %v89_v31  ;;  %v59_v30 = vld [vmem:[#allocation2 + $0x78] sm:$0xff] }
  0x35   :  { %235 = vmatmul.f32.gmra.mxu1 %v69_v32  ;;  %338 = vmatpush.msrb.mxu2 %v167_v33  ;;  %v191_v31 = vld [vmem:[#allocation5 + $0x218] sm:$0xff]  ;;  %v190_v32 = vld [vmem:[#allocation5 + $0x210] sm:$0xff]  ;;  %v189_v33 = vld [vmem:[#allocation5 + $0x208] sm:$0xff] }
  0x36   :  { %402 = vmatpush.msrb.mxu3 %v184_v34  ;;  %273 = vmatpush.msrb.mxu1 %v151_v35  ;;  %v51_v34 = vld [vmem:[#allocation2 + $0x38] sm:$0xff]  ;;  %v50_v35 = vld [vmem:[#allocation2 + $0x30] sm:$0xff] }
  0x37   :  { %259 = vmatmul.f32.gmra.mxu3 %v109_v36  ;;  %339 = vmatpush.msrb.mxu2 %v166_v37  ;;  %v188_v36 = vld [vmem:[#allocation5 + $0x200] sm:$0xff] }
  0x38   :  { %403 = vmatpush.msrb.mxu3 %v183_v38  ;;  %464 = vmatpush.msrb.mxu0 %v203_v39  ;;  %v52_v37 = vld [vmem:[#allocation2 + $0x40] sm:$0xff] }
  0x39   :  { %274 = vmatpush.msrb.mxu1 %v150_v40  ;;  %340 = vmatpush.msrb.mxu2 %v165_v41  ;;  %v48_v38 = vld [vmem:[#allocation2 + $0x20] sm:$0xff]  ;;  %v55_v40 = vld [vmem:[#allocation2 + $0x58] sm:$0xff]  ;;  %v57_v41 = vld [vmem:[#allocation2 + $0x68] sm:$0xff] }
  0x3a   :  { %404 = vmatpush.msrb.mxu3 %v182_v42  ;;  %465 = vmatpush.msrb.mxu0 %v202_v43  ;;  %v56_v39 = vld [vmem:[#allocation2 + $0x60] sm:$0xff]  ;;  %v53_v42 = vld [vmem:[#allocation2 + $0x48] sm:$0xff] }
  0x3b   :  { %275 = vmatpush.msrb.mxu1 %v149_v44  ;;  %341 = vmatpush.msrb.mxu2 %v164_v45  ;;  %v61_v43 = vld [vmem:[#allocation2 + $0x88] sm:$0xff]  ;;  %v60_v44 = vld [vmem:[#allocation2 + $0x80] sm:$0xff]  ;;  %v62_v45 = vld [vmem:[#allocation2 + $0x90] sm:$0xff] }
  0x3c   :  { %405 = vmatpush.msrb.mxu3 %v181_v46  ;;  %466 = vmatpush.msrb.mxu0 %v201_v47  ;;  %v58_v46 = vld [vmem:[#allocation2 + $0x70] sm:$0xff] }
  0x3d   :  { %276 = vmatpush.msrb.mxu1 %v148_v48  ;;  %250 = vmatmul.f32.gmra.mxu2 %v94_v49  ;;  %v66_v47 = vld [vmem:[#allocation2 + $0xb0] sm:$0xff]  ;;  %v65_v48 = vld [vmem:[#allocation2 + $0xa8] sm:$0xff]  ;;  %v67_v49 = vld [vmem:[#allocation2 + $0xb8] sm:$0xff] }
  0x3e   :  { %238 = vmatmul.f32.gmra.mxu1 %v74_v50  ;;  %342 = vmatpush.msrb.mxu2 %v163_v51  ;;  %v63_v50 = vld [vmem:[#allocation2 + $0x98] sm:$0xff] }
  0x3f   :  { %406 = vmatpush.msrb.mxu3 %v180_v52  ;;  %467 = vmatpush.msrb.mxu0 %v200_v53  ;;  %v71_v51 = vld [vmem:[#allocation2 + $0xd8] sm:$0xff]  ;;  %v70_v52 = vld [vmem:[#allocation2 + $0xd0] sm:$0xff]  ;;  %v72_v53 = vld [vmem:[#allocation2 + $0xe0] sm:$0xff] }
  0x40   :  { %277 = vmatpush.msrb.mxu1 %v147_v54  ;;  %223 = vmatmul.f32.gmra.mxu0 %v49_v55  ;;  %v68_v54 = vld [vmem:[#allocation2 + $0xc0] sm:$0xff] }
  0x41   :  { %262 = vmatmul.f32.gmra.mxu3 %v114_v56  ;;  %343 = vmatpush.msrb.mxu2 %v162_v57  ;;  %v76_v55 = vld [vmem:[#allocation2 + $0x100] sm:$0xff]  ;;  %v75_v56 = vld [vmem:[#allocation2 + $0xf8] sm:$0xff]  ;;  %v77_v57 = vld [vmem:[#allocation2 + $0x108] sm:$0xff] }
  0x42   :  { %407 = vmatpush.msrb.mxu3 %v179_v58  ;;  %468 = vmatpush.msrb.mxu0 %v199_v59  ;;  %v73_v58 = vld [vmem:[#allocation2 + $0xe8] sm:$0xff] }
  0x43   :  { %278 = vmatpush.msrb.mxu1 %v146_v60  ;;  %344 = vmatpush.msrb.mxu2 %v161_v61  ;;  %v81_v59 = vld [vmem:[#allocation2 + $0x128] sm:$0xff]  ;;  %v80_v60 = vld [vmem:[#allocation2 + $0x120] sm:$0xff]  ;;  %v82_v61 = vld [vmem:[#allocation2 + $0x130] sm:$0xff] }
  0x44   :  { %408 = vmatpush.msrb.mxu3 %v178_v62  ;;  %469 = vmatpush.msrb.mxu0 %v198_v63  ;;  %v78_v62 = vld [vmem:[#allocation2 + $0x110] sm:$0xff] }
  0x45   :  { %279 = vmatpush.msrb.mxu1 %v145_v0  ;;  %345 = vmatpush.msrb.mxu2 %v160_v1  ;;  %v86_v63 = vld [vmem:[#allocation2 + $0x150] sm:$0xff]  ;;  %v85_v0 = vld [vmem:[#allocation2 + $0x148] sm:$0xff]  ;;  %v87_v1 = vld [vmem:[#allocation2 + $0x158] sm:$0xff] }
  0x46   :  { %409 = vmatpush.msrb.mxu3 %v177_v2  ;;  %470 = vmatpush.msrb.mxu0 %v197_v3  ;;  %v83_v2 = vld [vmem:[#allocation2 + $0x138] sm:$0xff] }
  0x47   :  { %280 = vmatpush.msrb.mxu1 %v144_v4  ;;  %253 = vmatmul.f32.gmra.mxu2 %v99_v5  ;;  %v91_v3 = vld [vmem:[#allocation2 + $0x178] sm:$0xff]  ;;  %v90_v4 = vld [vmem:[#allocation2 + $0x170] sm:$0xff]  ;;  %v92_v5 = vld [vmem:[#allocation2 + $0x180] sm:$0xff] }
  0x48   :  { %241 = vmatmul.f32.gmra.mxu1 %v79_v6  ;;  %346 = vmatpush.msrb.mxu2 %v159_v7  ;;  %v88_v6 = vld [vmem:[#allocation2 + $0x160] sm:$0xff] }
  0x49   :  { %410 = vmatpush.msrb.mxu3 %v176_v8  ;;  %471 = vmatpush.msrb.mxu0 %v196_v9  ;;  %v96_v7 = vld [vmem:[#allocation2 + $0x1a0] sm:$0xff]  ;;  %v95_v8 = vld [vmem:[#allocation2 + $0x198] sm:$0xff]  ;;  %v97_v9 = vld [vmem:[#allocation2 + $0x1a8] sm:$0xff] }
  0x4a   :  { %281 = vmatpush.msrb.mxu1 %v143_v10  ;;  %226 = vmatmul.f32.gmra.mxu0 %v54_v11  ;;  %v93_v10 = vld [vmem:[#allocation2 + $0x188] sm:$0xff] }
  0x4b   :  { %265 = vmatmul.f32.gmra.mxu3 %v119_v12  ;;  %347 = vmatpush.msrb.mxu2 %v158_v13  ;;  %v101_v11 = vld [vmem:[#allocation2 + $0x1c8] sm:$0xff]  ;;  %v100_v12 = vld [vmem:[#allocation2 + $0x1c0] sm:$0xff]  ;;  %v102_v13 = vld [vmem:[#allocation2 + $0x1d0] sm:$0xff] }
  0x4c   :  { %411 = vmatpush.msrb.mxu3 %v175_v14  ;;  %472 = vmatpush.msrb.mxu0 %v195_v15  ;;  %v98_v14 = vld [vmem:[#allocation2 + $0x1b0] sm:$0xff] }
  0x4d   :  { %282 = vmatpush.msrb.mxu1 %v142_v16  ;;  %348 = vmatpush.msrb.mxu2 %v157_v17  ;;  %v106_v16 = vld [vmem:[#allocation2 + $0x1f0] sm:$0xff]  ;;  %v105_v17 = vld [vmem:[#allocation2 + $0x1e8] sm:$0xff] }
  0x4e   :  { %412 = vmatpush.msrb.mxu3 %v174_v18  ;;  %473 = vmatpush.msrb.mxu0 %v194_v19  ;;  %v107_v19 = vld [vmem:[#allocation2 + $0x1f8] sm:$0xff] }
  0x4f   :  { %283 = vmatpush.msrb.mxu1 %v141_v20  ;;  %349 = vmatpush.msrb.mxu2 %v156_v21  ;;  %v103_v20 = vld [vmem:[#allocation2 + $0x1d8] sm:$0xff] }
  0x50   :  { %413 = vmatpush.msrb.mxu3 %v173_v22  ;;  %474 = vmatpush.msrb.mxu0 %v193_v23 }
  0x51   :  { %284 = vmatpush.msrb.mxu1 %v140_v24  ;;  %350 = vmatmul.f32.vlgmr.msrb.gmra.mxu2 %v46_v25  ;;  %v111_v24 = vld [vmem:[#allocation2 + $0x218] sm:$0xff]  ;;  %v110_v25 = vld [vmem:[#allocation2 + $0x210] sm:$0xff] }
  0x52   :  { %285 = vmatmul.f32.vlgmr.msrb.gmra.mxu1 %v45_v26  ;;  %414 = vmatpush.msrb.mxu3 %v172_v27  ;;  %v112_v27 = vld [vmem:[#allocation2 + $0x220] sm:$0xff] }
  0x53   :  { %475 = vmatpush.msrb.mxu0 %v192_v28  ;;  %415 = vmatmul.f32.vlgmr.msrb.gmra.mxu3 %v47_v29  ;;  %v108_v28 = vld [vmem:[#allocation2 + $0x200] sm:$0xff] }
  0x54   :  { %229 = vmatmul.f32.gmra.mxu0 %v59_v30 }
  0x55   :  { %476 = vmatpush.msrb.mxu0 %v191_v31 }
  0x57   :  { %477 = vmatpush.msrb.mxu0 %v190_v32  ;;  %v116_v32 = vld [vmem:[#allocation2 + $0x240] sm:$0xff] }
  0x59   :  { %478 = vmatpush.msrb.mxu0 %v189_v33  ;;  %353 = vmatmul.f32.gmra.mxu2 %v51_v34  ;;  %v115_v33 = vld [vmem:[#allocation2 + $0x238] sm:$0xff]  ;;  %v117_v34 = vld [vmem:[#allocation2 + $0x248] sm:$0xff] }
  0x5a   :  { %288 = vmatmul.f32.gmra.mxu1 %v50_v35 }
  0x5b   :  { %479 = vmatpush.msrb.mxu0 %v188_v36  ;;  %418 = vmatmul.f32.gmra.mxu3 %v52_v37  ;;  %v113_v36 = vld [vmem:[#allocation2 + $0x228] sm:$0xff] }
  0x5c   :  { %480 = vmatmul.f32.vlgmr.msrb.gmra.mxu0 %v48_v38 }
  0x61   :  { %356 = vmatmul.f32.gmra.mxu2 %v56_v39  ;;  %v121_v39 = vld [vmem:[#allocation2 + $0x268] sm:$0xff] }
  0x62   :  { %291 = vmatmul.f32.gmra.mxu1 %v55_v40 }
  0x63   :  { %421 = vmatmul.f32.gmra.mxu3 %v57_v41  ;;  %v120_v41 = vld [vmem:[#allocation2 + $0x260] sm:$0xff] }
  0x64   :  { %483 = vmatmul.f32.gmra.mxu0 %v53_v42  ;;  %v122_v42 = vld [vmem:[#allocation2 + $0x270] sm:$0xff] }
  0x69   :  { %359 = vmatmul.f32.gmra.mxu2 %v61_v43  ;;  %v118_v43 = vld [vmem:[#allocation2 + $0x250] sm:$0xff] }
  0x6a   :  { %294 = vmatmul.f32.gmra.mxu1 %v60_v44 }
  0x6b   :  { %424 = vmatmul.f32.gmra.mxu3 %v62_v45 }
  0x6c   :  { %486 = vmatmul.f32.gmra.mxu0 %v58_v46 }
  0x71   :  { %362 = vmatmul.f32.gmra.mxu2 %v66_v47 }
  0x72   :  { %297 = vmatmul.f32.gmra.mxu1 %v65_v48  ;;  %v123_v48 = vld [vmem:[#allocation2 + $0x278] sm:$0xff] }
  0x73   :  { %427 = vmatmul.f32.gmra.mxu3 %v67_v49 }
  0x74   :  { %489 = vmatmul.f32.gmra.mxu0 %v63_v50 }
  0x79   :  { %365 = vmatmul.f32.gmra.mxu2 %v71_v51 }
  0x7a   :  { %300 = vmatmul.f32.gmra.mxu1 %v70_v52 }
  0x7b   :  { %430 = vmatmul.f32.gmra.mxu3 %v72_v53 }
  0x7c   :  { %492 = vmatmul.f32.gmra.mxu0 %v68_v54 }
  0x81   :  { %368 = vmatmul.f32.gmra.mxu2 %v76_v55 }
  0x82   :  { %303 = vmatmul.f32.gmra.mxu1 %v75_v56 }
  0x83   :  { %433 = vmatmul.f32.gmra.mxu3 %v77_v57 }
  0x84   :  { %495 = vmatmul.f32.gmra.mxu0 %v73_v58 }
  0x89   :  { %371 = vmatmul.f32.gmra.mxu2 %v81_v59 }
  0x8a   :  { %306 = vmatmul.f32.gmra.mxu1 %v80_v60 }
  0x8b   :  { %436 = vmatmul.f32.gmra.mxu3 %v82_v61 }
  0x8c   :  { %498 = vmatmul.f32.gmra.mxu0 %v78_v62 }
  0x91   :  { %374 = vmatmul.f32.gmra.mxu2 %v86_v63 }
  0x92   :  { %309 = vmatmul.f32.gmra.mxu1 %v85_v0 }
  0x93   :  { %439 = vmatmul.f32.gmra.mxu3 %v87_v1 }
  0x94   :  { %501 = vmatmul.f32.gmra.mxu0 %v83_v2 }
  0x99   :  { %377 = vmatmul.f32.gmra.mxu2 %v91_v3 }
  0x9a   :  { %312 = vmatmul.f32.gmra.mxu1 %v90_v4 }
  0x9b   :  { %442 = vmatmul.f32.gmra.mxu3 %v92_v5 }
  0x9c   :  { %504 = vmatmul.f32.gmra.mxu0 %v88_v6 }
  0xa1   :  { %380 = vmatmul.f32.gmra.mxu2 %v96_v7 }
  0xa2   :  { %315 = vmatmul.f32.gmra.mxu1 %v95_v8 }
  0xa3   :  { %445 = vmatmul.f32.gmra.mxu3 %v97_v9 }
  0xa4   :  { %507 = vmatmul.f32.gmra.mxu0 %v93_v10 }
  0xa9   :  { %383 = vmatmul.f32.gmra.mxu2 %v101_v11  ;;  %v729_v15 = vpop.f32.mrf.mxu1 }
  0xaa   :  { %318 = vmatmul.f32.gmra.mxu1 %v100_v12 }
  0xab   :  { %448 = vmatmul.f32.gmra.mxu3 %v102_v13 }
  0xac   :  { %510 = vmatmul.f32.gmra.mxu0 %v98_v14 }
  0xaf   :  { %v731_v18 = vpop.f32.mrf.mxu2  ;;  %v221_v23 = vpop.f32.mrf.mxu0 }
  0xb1   :  { %386 = vmatmul.f32.gmra.mxu2 %v106_v16  ;;  %v733_v21 = vpop.f32.mrf.mxu3 }
  0xb2   :  { %321 = vmatmul.f32.gmra.mxu1 %v105_v17  ;;  %v735_v22 = vpop.f32.mrf.mxu1 }
  0xb3   :  { %451 = vmatmul.f32.gmra.mxu3 %v107_v19 }
  0xb4   :  { %513 = vmatmul.f32.gmra.mxu0 %v103_v20 }
  0xb7   :  { %v737_v26 = vpop.f32.mrf.mxu2 }
  0xb9   :  { %389 = vmatmul.f32.gmra.mxu2 %v111_v24 }
  0xba   :  { %324 = vmatmul.f32.gmra.mxu1 %v110_v25  ;;  %v739_v29 = vpop.f32.mrf.mxu3 }
  0xbb   :  { %454 = vmatmul.f32.gmra.mxu3 %v112_v27  ;;  %v741_v30 = vpop.f32.mrf.mxu1 }
  0xbc   :  { %516 = vmatmul.f32.gmra.mxu0 %v108_v28 }
  0xbd   :  { %v224_v31 = vpop.f32.mrf.mxu0 }
  0xc0   :  { %v743_v35 = vpop.f32.mrf.mxu2 }
  0xc1   :  { %392 = vmatmul.f32.gmra.mxu2 %v116_v32 }
  0xc2   :  { %327 = vmatmul.f32.gmra.mxu1 %v115_v33 }
  0xc3   :  { %457 = vmatmul.f32.gmra.mxu3 %v117_v34 }
  0xc4   :  { %519 = vmatmul.f32.gmra.mxu0 %v113_v36  ;;  %v745_v37 = vpop.f32.mrf.mxu3 }
  0xc5   :  { %v747_v38 = vpop.f32.mrf.mxu1 }
  0xc7   :  { %v227_v40 = vpop.f32.mrf.mxu0 }
  0xc9   :  { %395 = vmatmul.f32.gmra.mxu2 %v121_v39 }
  0xca   :  { %330 = vmatmul.f32.gmra.mxu1 %v120_v41  ;;  %v749_v44 = vpop.f32.mrf.mxu2 }
  0xcb   :  { %460 = vmatmul.f32.gmra.mxu3 %v122_v42 }
  0xcc   :  { %522 = vmatmul.f32.gmra.mxu0 %v118_v43 }
  0xce   :  { %v751_v45 = vpop.f32.mrf.mxu3 }
  0xcf   :  { %v286_v46 = vpop.f32.mrf.mxu1 }
  0xd0   :  { %v287_v49 = vadd.f32 %v286_v46, %v221_v23 }
  0xd1   :  { %v230_v47 = vpop.f32.mrf.mxu0 }
  0xd4   :  { %525 = vmatmul.f32.gmra.mxu0 %v123_v48  ;;  %v351_v50 = vpop.f32.mrf.mxu2 }
  0xd5   :  { %v352_v51 = vadd.f32 %v351_v50, %v287_v49 }
  0xd6   :  { %v416_v52 = vpop.f32.mrf.mxu3 }
  0xd7   :  { %v289_v53 = vpop.f32.mrf.mxu1  ;;  %v417_v54 = vadd.f32 %v416_v52, %v352_v51 }
  0xd8   :  { %v290_v57 = vadd.f32 %v289_v53, %v224_v31 }
  0xd9   :  { %v481_v55 = vpop.f32.mrf.mxu0 }
  0xda   :  { %v482_v56 = vadd.f32 %v481_v55, %v417_v54 }
  0xdc   :  { %529 = vst [vmem:[#allocation7] sm:$0xff] %v482_v56  ;;  %v354_v58 = vpop.f32.mrf.mxu2 }
  0xdd   :  { %v355_v59 = vadd.f32 %v354_v58, %v290_v57 }
  0xde   :  { %v419_v60 = vpop.f32.mrf.mxu3 }
  0xdf   :  { %v292_v61 = vpop.f32.mrf.mxu1  ;;  %v420_v62 = vadd.f32 %v419_v60, %v355_v59 }
  0xe0   :  { %v293_v1 = vadd.f32 %v292_v61, %v227_v40 }
  0xe1   :  { %v484_v63 = vpop.f32.mrf.mxu0 }
  0xe2   :  { %v485_v0 = vadd.f32 %v484_v63, %v420_v62 }
  0xe4   :  { %530 = vst [vmem:[#allocation7 + $0x8] sm:$0xff] %v485_v0  ;;  %v357_v2 = vpop.f32.mrf.mxu2 }
  0xe5   :  { %v358_v3 = vadd.f32 %v357_v2, %v293_v1 }
  0xe6   :  { %v422_v4 = vpop.f32.mrf.mxu3 }
  0xe7   :  { %v295_v5 = vpop.f32.mrf.mxu1  ;;  %v423_v6 = vadd.f32 %v422_v4, %v358_v3 }
  0xe8   :  { %v296_v9 = vadd.f32 %v295_v5, %v230_v47 }
  0xe9   :  { %v487_v7 = vpop.f32.mrf.mxu0 }
  0xea   :  { %v488_v8 = vadd.f32 %v487_v7, %v423_v6 }
  0xec   :  { %531 = vst [vmem:[#allocation7 + $0x10] sm:$0xff] %v488_v8  ;;  %v360_v10 = vpop.f32.mrf.mxu2 }
  0xed   :  { %v361_v11 = vadd.f32 %v360_v10, %v296_v9 }
  0xee   :  { %v425_v12 = vpop.f32.mrf.mxu3 }
  0xef   :  { %v298_v13 = vpop.f32.mrf.mxu1  ;;  %v426_v14 = vadd.f32 %v425_v12, %v361_v11 }
  0xf0   :  { %v299_v19 = vadd.f32 %v298_v13, %v729_v15 }
  0xf1   :  { %v490_v16 = vpop.f32.mrf.mxu0 }
  0xf2   :  { %v491_v17 = vadd.f32 %v490_v16, %v426_v14 }
  0xf4   :  { %532 = vst [vmem:[#allocation7 + $0x18] sm:$0xff] %v491_v17  ;;  %v363_v20 = vpop.f32.mrf.mxu2 }
  0xf5   :  { %v364_v23 = vadd.f32 %v363_v20, %v299_v19 }
  0xf6   :  { %v428_v24 = vpop.f32.mrf.mxu3 }
  0xf7   :  { %v301_v25 = vpop.f32.mrf.mxu1  ;;  %v429_v27 = vadd.f32 %v428_v24, %v364_v23 }
  0xf8   :  { %v302_v32 = vadd.f32 %v301_v25, %v735_v22 }
  0xf9   :  { %v493_v28 = vpop.f32.mrf.mxu0 }
  0xfa   :  { %v494_v31 = vadd.f32 %v493_v28, %v429_v27 }
  0xfc   :  { %533 = vst [vmem:[#allocation7 + $0x20] sm:$0xff] %v494_v31  ;;  %v366_v33 = vpop.f32.mrf.mxu2 }
  0xfd   :  { %v367_v34 = vadd.f32 %v366_v33, %v302_v32 }
  0xfe   :  { %v431_v36 = vpop.f32.mrf.mxu3 }
  0xff   :  { %v304_v39 = vpop.f32.mrf.mxu1  ;;  %v432_v40 = vadd.f32 %v431_v36, %v367_v34 }
 0x100   :  { %v305_v15 = vadd.f32 %v304_v39, %v741_v30 }
 0x101   :  { %v496_v41 = vpop.f32.mrf.mxu0 }
 0x102   :  { %v497_v42 = vadd.f32 %v496_v41, %v432_v40 }
 0x104   :  { %534 = vst [vmem:[#allocation7 + $0x28] sm:$0xff] %v497_v42  ;;  %v369_v43 = vpop.f32.mrf.mxu2 }
 0x105   :  { %v370_v46 = vadd.f32 %v369_v43, %v305_v15 }
 0x106   :  { %v434_v47 = vpop.f32.mrf.mxu3 }
 0x107   :  { %v307_v48 = vpop.f32.mrf.mxu1  ;;  %v435_v49 = vadd.f32 %v434_v47, %v370_v46 }
 0x108   :  { %v308_v22 = vadd.f32 %v307_v48, %v747_v38 }
 0x109   :  { %v499_v50 = vpop.f32.mrf.mxu0 }
 0x10a   :  { %v500_v51 = vadd.f32 %v499_v50, %v435_v49 }
 0x10c   :  { %535 = vst [vmem:[#allocation7 + $0x30] sm:$0xff] %v500_v51  ;;  %v372_v52 = vpop.f32.mrf.mxu2 }
 0x10d   :  { %v373_v53 = vadd.f32 %v372_v52, %v308_v22 }
 0x10e   :  { %v437_v54 = vpop.f32.mrf.mxu3 }
 0x10f   :  { %v310_v55 = vpop.f32.mrf.mxu1  ;;  %v438_v56 = vadd.f32 %v437_v54, %v373_v53 }
 0x110   :  { %v311_v30 = vadd.f32 %v310_v55, %v731_v18 }
 0x111   :  { %v502_v57 = vpop.f32.mrf.mxu0 }
 0x112   :  { %v503_v58 = vadd.f32 %v502_v57, %v438_v56 }
 0x114   :  { %536 = vst [vmem:[#allocation7 + $0x38] sm:$0xff] %v503_v58  ;;  %v375_v59 = vpop.f32.mrf.mxu2 }
 0x115   :  { %v376_v60 = vadd.f32 %v375_v59, %v311_v30 }
 0x116   :  { %v440_v61 = vpop.f32.mrf.mxu3 }
 0x117   :  { %v313_v62 = vpop.f32.mrf.mxu1  ;;  %v441_v63 = vadd.f32 %v440_v61, %v376_v60 }
 0x118   :  { %v314_v38 = vadd.f32 %v313_v62, %v737_v26 }
 0x119   :  { %v505_v0 = vpop.f32.mrf.mxu0 }
 0x11a   :  { %v506_v1 = vadd.f32 %v505_v0, %v441_v63 }
 0x11c   :  { %537 = vst [vmem:[#allocation7 + $0x40] sm:$0xff] %v506_v1  ;;  %v378_v2 = vpop.f32.mrf.mxu2 }
 0x11d   :  { %v379_v3 = vadd.f32 %v378_v2, %v314_v38 }
 0x11e   :  { %v443_v4 = vpop.f32.mrf.mxu3 }
 0x11f   :  { %v316_v5 = vpop.f32.mrf.mxu1  ;;  %v444_v6 = vadd.f32 %v443_v4, %v379_v3 }
 0x120   :  { %v317_v18 = vadd.f32 %v316_v5, %v743_v35 }
 0x121   :  { %v508_v7 = vpop.f32.mrf.mxu0 }
 0x122   :  { %v509_v8 = vadd.f32 %v508_v7, %v444_v6 }
 0x124   :  { %538 = vst [vmem:[#allocation7 + $0x48] sm:$0xff] %v509_v8  ;;  %v381_v9 = vpop.f32.mrf.mxu2 }
 0x125   :  { %v382_v10 = vadd.f32 %v381_v9, %v317_v18 }
 0x126   :  { %v446_v11 = vpop.f32.mrf.mxu3 }
 0x127   :  { %v319_v12 = vpop.f32.mrf.mxu1  ;;  %v447_v13 = vadd.f32 %v446_v11, %v382_v10 }
 0x128   :  { %v320_v26 = vadd.f32 %v319_v12, %v749_v44 }
 0x129   :  { %v511_v14 = vpop.f32.mrf.mxu0 }
 0x12a   :  { %v512_v16 = vadd.f32 %v511_v14, %v447_v13 }
 0x12c   :  { %539 = vst [vmem:[#allocation7 + $0x50] sm:$0xff] %v512_v16  ;;  %v384_v17 = vpop.f32.mrf.mxu2 }
 0x12d   :  { %v385_v19 = vadd.f32 %v384_v17, %v320_v26 }
 0x12e   :  { %v449_v20 = vpop.f32.mrf.mxu3 }
 0x12f   :  { %v322_v23 = vpop.f32.mrf.mxu1  ;;  %v450_v24 = vadd.f32 %v449_v20, %v385_v19 }
 0x130   :  { %v323_v35 = vadd.f32 %v322_v23, %v733_v21 }
 0x131   :  { %v514_v25 = vpop.f32.mrf.mxu0 }
 0x132   :  { %v515_v27 = vadd.f32 %v514_v25, %v450_v24 }
 0x134   :  { %540 = vst [vmem:[#allocation7 + $0x58] sm:$0xff] %v515_v27  ;;  %v387_v28 = vpop.f32.mrf.mxu2 }
 0x135   :  { %v388_v31 = vadd.f32 %v387_v28, %v323_v35 }
 0x136   :  { %v452_v32 = vpop.f32.mrf.mxu3 }
 0x137   :  { %v325_v33 = vpop.f32.mrf.mxu1  ;;  %v453_v34 = vadd.f32 %v452_v32, %v388_v31 }
 0x138   :  { %v326_v44 = vadd.f32 %v325_v33, %v739_v29 }
 0x139   :  { %v517_v36 = vpop.f32.mrf.mxu0 }
 0x13a   :  { %v518_v39 = vadd.f32 %v517_v36, %v453_v34 }
 0x13c   :  { %541 = vst [vmem:[#allocation7 + $0x60] sm:$0xff] %v518_v39  ;;  %v390_v40 = vpop.f32.mrf.mxu2 }
 0x13d   :  { %v391_v41 = vadd.f32 %v390_v40, %v326_v44 }
 0x13e   :  { %v455_v42 = vpop.f32.mrf.mxu3 }
 0x13f   :  { %v328_v15 = vpop.f32.mrf.mxu1  ;;  %v456_v43 = vadd.f32 %v455_v42, %v391_v41 }
 0x140   :  { %v329_v21 = vadd.f32 %v328_v15, %v745_v37 }
 0x141   :  { %v520_v46 = vpop.f32.mrf.mxu0 }
 0x142   :  { %v521_v47 = vadd.f32 %v520_v46, %v456_v43 }
 0x144   :  { %542 = vst [vmem:[#allocation7 + $0x68] sm:$0xff] %v521_v47  ;;  %v393_v48 = vpop.f32.mrf.mxu2 }
 0x145   :  { %v394_v49 = vadd.f32 %v393_v48, %v329_v21 }
 0x146   :  { %v458_v50 = vpop.f32.mrf.mxu3 }
 0x147   :  { %v459_v51 = vadd.f32 %v458_v50, %v394_v49  ;;  %v331_v22 = vpop.f32.mrf.mxu1 }
 0x148   :  { %v332_v29 = vadd.f32 %v331_v22, %v751_v45 }
 0x149   :  { %v523_v52 = vpop.f32.mrf.mxu0 }
 0x14a   :  { %v524_v53 = vadd.f32 %v523_v52, %v459_v51 }
 0x14c   :  { %543 = vst [vmem:[#allocation7 + $0x70] sm:$0xff] %v524_v53  ;;  %v396_v54 = vpop.f32.mrf.mxu2 }
 0x14d   :  { %v397_v55 = vadd.f32 %v396_v54, %v332_v29 }
 0x14e   :  { %v461_v56 = vpop.f32.mrf.mxu3 }
 0x14f   :  { %v462_v57 = vadd.f32 %v461_v56, %v397_v55 }
 0x151   :  { %v526_v37 = vpop.f32.mrf.mxu0 }
 0x152   :  { %v527_v58 = vadd.f32 %v526_v37, %v462_v57 }
 0x154   :  { %544 = vst [vmem:[#allocation7 + $0x78] sm:$0xff] %v527_v58 }
 0x155   :  { %557 = dma.vmem_to_hbm [thread:$0]  %s550_s1, 2048, %s552_s25, [#allocation4], %s702_s21, %s702_s21, %s703_s22  }
 0x156   :  { %696 = dma.done.wait [#allocation4], 2048  }
 0x157   :  { %697 = vsyncadd [#allocation4], 4294965248 }
 0x158   :  { %562 = vsyncpa [#allocation3], 1 }
 0x159   :  { %563 = vsyncpa [#allocation6], 1 }
 0x15a   :  { %564 = vsyncpa [#allocation4], 1 }

</bundles_post_ra>
